<compile_context>
chip_gen: v5e
topology: v5e:2x2
jax: 0.10.0
libtpu: 0.0.40
codegen_flags: <defaults>
</compile_context>

<pallas_src>
import math
from functools import partial

import jax
import jax.numpy as jnp
from jax.experimental import pallas as pl
from jax.experimental.pallas import tpu as pltpu

EPS = 1e-5


# ------------------------------- helpers --------------------------------------
def _pick_tile(S):
    """Largest 128-multiple sequence tile that divides S (full S for tiny demos)."""
    for t in (512, 256, 128):
        if S % t == 0:
            return t
    # TODO(synk): pad S to a multiple of 128 so large unaligned S never falls
    #             back to a full-row tile.
    return S


def _const_spec(shape):
    """Grid-constant block: block index never changes -> DMA'd once, resident."""
    return pl.BlockSpec(shape, lambda *_: (0,) * len(shape))


def _compiler_params(resident_bytes, temp_bytes):
    # Explicit scoped-VMEM budget (v7x default scoped limit is 32 MiB):
    # 2x for double buffering of the grid-varying blocks + temporaries + headroom.
    limit = int(min(2 * resident_bytes + temp_bytes + (8 << 20), 64 << 20))
    return pltpu.CompilerParams(
        dimension_semantics=("parallel", "parallel"),
        vmem_limit_bytes=limit)


# --------------------------- QKV projection kernel ----------------------------
def qkv_proj_kernel(x_ref, wq_ref, bq_ref, wk_ref, bk_ref, wv_ref, bv_ref,
                    q_ref, k_ref, v_ref):
    """One step = one (batch, seq-tile): full-E-width projections for all heads."""
    x = x_ref[0]                                                   # (ts, E) bf16
    q_ref[0] = (jnp.dot(x, wq_ref[...], preferred_element_type=jnp.float32)
                + bq_ref[...]).astype(q_ref.dtype)                 # scale folded in
    k_ref[0] = (jnp.dot(x, wk_ref[...], preferred_element_type=jnp.float32)
                + bk_ref[...]).astype(k_ref.dtype)
    v_ref[0] = (jnp.dot(x, wv_ref[...], preferred_element_type=jnp.float32)
                + bv_ref[...]).astype(v_ref.dtype)


def qkv_projection(x, p, ts):
    B, S, E = x.shape
    bf2, f4 = 2, 4
    resident = (ts * E * bf2                        # x tile
                + 3 * (E * E * bf2 + E * f4)        # wq/wk/wv + biases (resident)
                + 3 * ts * E * bf2)                 # q/k/v output tiles
    temps = 3 * ts * E * f4

    xmap = lambda b, si: (b, si, 0)
    out = jax.ShapeDtypeStruct((B, S, E), jnp.bfloat16)
    return pl.pallas_call(
        qkv_proj_kernel,
        out_shape=(out, out, out),
        grid_spec=pltpu.PrefetchScalarGridSpec(
            num_scalar_prefetch=0,
            grid=(B, S // ts),
            in_specs=[pl.BlockSpec((1, ts, E), xmap),
                      _const_spec((E, E)), _const_spec((1, E)),
                      _const_spec((E, E)), _const_spec((1, E)),
                      _const_spec((E, E)), _const_spec((1, E))],
            out_specs=[pl.BlockSpec((1, ts, E), xmap)] * 3,
        ),
        compiler_params=_compiler_params(resident, temps),
    )(x, p["wq"], p["bq"], p["wk"], p["bk"], p["wv"], p["bv"])


# ----------------------- attention + FFN fused kernel --------------------------
def attention_ffn_kernel(x_ref, q_ref, k_ref, v_ref, bias_ref,
                         wo_ref, bo_ref, g1_ref, b1_ref, g2_ref, b2_ref,
                         w1_ref, bf1_ref, w2_ref, bf2_ref,
                         out_ref, *, num_heads):
    """One step = one (batch, query-tile); all heads batched, weights resident."""
    q = q_ref[0]                      # (H, tq, D) bf16 (already scaled by 1/sqrt(D))
    k = k_ref[0]                      # (H, S,  D) bf16
    v = v_ref[0]                      # (H, S,  D) bf16

    # Scores for all heads at once (bf16 MXU, f32 accumulate).
    s = jnp.einsum("hqd,hkd->hqk", q, k, preferred_element_type=jnp.float32)
    # Additive mask (0 / -1e9).  NOTE: if an entire query row is masked, this
    # keeps the raw score differences instead of the reference's uniform row;
    # identical for padding masks with at least one valid key per row.
    s = s + bias_ref[0].astype(jnp.float32)
    s = s - jnp.max(s, axis=-1, keepdims=True)
    prob = jnp.exp(s)
    prob = prob * pl.reciprocal(jnp.sum(prob, axis=-1, keepdims=True), approx=True)

    ctx = jnp.einsum("hqk,hkd->hqd", prob.astype(jnp.bfloat16), v,
                     preferred_element_type=jnp.float32)           # (H, tq, D) f32

    # Output projection: accumulate each head's slice (rows h*D:(h+1)*D of Wo).
    tq = ctx.shape[1]
    E = wo_ref.shape[2]
    attn = jnp.zeros((tq, E), jnp.float32)
    for h in range(num_heads):        # static unroll over heads
        attn = attn + jnp.dot(ctx[h].astype(jnp.bfloat16), wo_ref[h],
                              preferred_element_type=jnp.float32)
    attn = attn + bo_ref[...]

    def layer_norm(z, g, b):
        mu = jnp.mean(z, axis=-1, keepdims=True)
        var = jnp.mean(jnp.square(z - mu), axis=-1, keepdims=True)
        return (z - mu) * jax.lax.rsqrt(var + EPS) * g + b

    x = x_ref[0].astype(jnp.float32)                  # residual path in f32
    h1 = layer_norm(attn + x, g1_ref[...], b1_ref[...])

    ff = jnp.dot(h1.astype(jnp.bfloat16), w1_ref[...],
                 preferred_element_type=jnp.float32) + bf1_ref[...]
    ff = jnp.maximum(ff, 0.0)
    ff = jnp.dot(ff.astype(jnp.bfloat16), w2_ref[...],
                 preferred_element_type=jnp.float32) + bf2_ref[...]

    # nn.Dropout is identity at inference; layer output emitted in bf16.
    out_ref[0] = layer_norm(ff + h1, g2_ref[...], b2_ref[...]).astype(out_ref.dtype)


def attention_ffn(x, qh, kh, vh, mask_bias, p, heads, tq):
    B, S, E = x.shape
    D = E // heads
    F = p["w1"].shape[1]
    bf2, f4 = 2, 4
    resident = (tq * E * bf2                      # x residual tile
                + heads * tq * D * bf2            # q tile
                + 2 * heads * S * D * bf2         # k, v (resident per batch)
                + tq * S * bf2                    # mask bias tile
                + tq * E * bf2                    # output tile
                + heads * D * E * bf2 + E * f4    # wo, bo
                + 4 * E * f4                      # LN params
                + E * F * bf2 + F * f4 + F * E * bf2 + E * f4)   # FFN
    temps = 2 * heads * tq * S * f4 + tq * F * f4 + 4 * tq * E * f4

    return pl.pallas_call(
        partial(attention_ffn_kernel, num_heads=heads),
        out_shape=jax.ShapeDtypeStruct((B, S, E), jnp.bfloat16),
        grid_spec=pltpu.PrefetchScalarGridSpec(
            num_scalar_prefetch=0,
            grid=(B, S // tq),
            in_specs=[
                pl.BlockSpec((1, tq, E), lambda b, qi: (b, qi, 0)),       # x residual
                pl.BlockSpec((1, heads, tq, D), lambda b, qi: (b, 0, qi, 0)),  # q
                pl.BlockSpec((1, heads, S, D), lambda b, qi: (b, 0, 0, 0)),    # k
                pl.BlockSpec((1, heads, S, D), lambda b, qi: (b, 0, 0, 0)),    # v
                pl.BlockSpec((1, tq, S), lambda b, qi: (b, qi, 0)),       # mask bias
                _const_spec((heads, D, E)), _const_spec((1, E)),          # wo_h, bo
                _const_spec((1, E)), _const_spec((1, E)),                 # gamma1, beta1
                _const_spec((1, E)), _const_spec((1, E)),                 # gamma2, beta2
                _const_spec((E, F)), _const_spec((1, F)),                 # w1, bf1
                _const_spec((F, E)), _const_spec((1, E)),                 # w2, bf2
            ],
            out_specs=pl.BlockSpec((1, tq, E), lambda b, qi: (b, qi, 0)),
        ),
        compiler_params=_compiler_params(resident, temps),
    )(x, qh, kh, vh, mask_bias,
      p["wo_h"], p["bo"], p["g1"], p["b1"], p["g2"], p["b2"],
      p["w1"], p["bf1"], p["w2"], p["bf2"])


# ------------------------------ per-layer wrapper ------------------------------
def transformer_block(x, mask_bias, p, heads):
    B, S, E = x.shape
    D = E // heads
    ts = _pick_tile(S)

    # Project Q/K/V exactly once per token (K/V never re-projected per q tile).
    q, k, v = qkv_projection(x, p, ts)

    # Head split is wrapper-side layout plumbing (O(S*E), bf16); keeps the
    # attention kernel free of in-kernel reshapes and gives lane-dense D blocks.
    def split_heads(t):
        return t.reshape(B, S, heads, D).transpose(0, 2, 1, 3)   # (B, H, S, D)

    return attention_ffn(x, split_heads(q), split_heads(k), split_heads(v),
                         mask_bias, p, heads, ts)


def prepare_layer_params(p, heads):
    """One-time prep: fold 1/sqrt(D) into wq/bq, split Wo per head, cast to bf16."""
    E = p["wq"].shape[0]
    D = E // heads
    scale = 1.0 / math.sqrt(D)
    bf16 = jnp.bfloat16
    return dict(
        wq=(p["wq"] * scale).astype(bf16), bq=(p["bq"] * scale).astype(jnp.float32),
        wk=p["wk"].astype(bf16), bk=p["bk"].astype(jnp.float32),
        wv=p["wv"].astype(bf16), bv=p["bv"].astype(jnp.float32),
        wo_h=p["wo"].reshape(heads, D, E).astype(bf16),   # head h uses rows h*D:(h+1)*D
        bo=p["bo"].astype(jnp.float32),
        g1=p["g1"].astype(jnp.float32), b1=p["b1"].astype(jnp.float32),
        g2=p["g2"].astype(jnp.float32), b2=p["b2"].astype(jnp.float32),
        w1=p["w1"].astype(bf16), bf1=p["bf1"].astype(jnp.float32),
        w2=p["w2"].astype(bf16), bf2=p["bf2"].astype(jnp.float32),
    )


def encoder(x, mask, layer_params, heads):
    # {0,1} mask -> additive bf16 bias (0 / -1e9), built once, shared by layers.
    mask_bias = ((mask.astype(jnp.float32) - 1.0) * 1e9).astype(jnp.bfloat16)
    params = [prepare_layer_params(p, heads) for p in layer_params]
    # Activations flow between layers in bf16 (halves activation HBM traffic);
    # residual / LayerNorm / softmax math stays f32 inside the kernels.
    h = x.astype(jnp.bfloat16)
    for p in params:
        h = transformer_block(h, mask_bias, p, heads)
    return h.astype(jnp.float32)


# ----------------------------- pure-JAX reference -----------------------------
def ref_block(x, mask, p, heads):
    B, S, E = x.shape
    D = E // heads
    q = x @ p["wq"] + p["bq"]
    k = x @ p["wk"] + p["bk"]
    v = x @ p["wv"] + p["bv"]
    q = q.reshape(B, S, heads, D).transpose(0, 2, 1, 3)
    k = k.reshape(B, S, heads, D).transpose(0, 2, 1, 3)
    v = v.reshape(B, S, heads, D).transpose(0, 2, 1, 3)
    s = jnp.einsum("bhqd,bhkd->bhqk", q, k) / math.sqrt(D)
    s = jnp.where(mask[:, None, :, :] > 0, s, -1e9)
    a = jax.nn.softmax(s, axis=-1)
    ctx = jnp.einsum("bhqk,bhkd->bhqd", a, v).transpose(0, 2, 1, 3).reshape(B, S, E)
    attn = ctx @ p["wo"] + p["bo"]

    def ln(z, g, b):
        mu = z.mean(-1, keepdims=True)
        var = ((z - mu) ** 2).mean(-1, keepdims=True)
        return (z - mu) / jnp.sqrt(var + EPS) * g + b

    h1 = ln(attn + x, p["g1"], p["b1"])
    ff = jnp.maximum(h1 @ p["w1"] + p["bf1"], 0.0) @ p["w2"] + p["bf2"]
    return ln(ff + h1, p["g2"], p["b2"])


def ref_encoder(x, mask, layer_params, heads):
    for p in layer_params:
        x = ref_block(x, mask, p, heads)
    return x


# ---------------------------------- main --------------------------------------
def init_layer_params(key, E, F):
    ks = jax.random.split(key, 6)
    n = lambda k, shp: (0.02 * jax.random.normal(k, shp)).astype(jnp.float32)
    return dict(
        wq=n(ks[0], (E, E)), bq=jnp.zeros((1, E), jnp.float32),
        wk=n(ks[1], (E, E)), bk=jnp.zeros((1, E), jnp.float32),
        wv=n(ks[2], (E, E)), bv=jnp.zeros((1, E), jnp.float32),
        wo=n(ks[3], (E, E)), bo=jnp.zeros((1, E), jnp.float32),
        g1=jnp.ones((1, E), jnp.float32), b1=jnp.zeros((1, E), jnp.float32),
        g2=jnp.ones((1, E), jnp.float32), b2=jnp.zeros((1, E), jnp.float32),
        w1=n(ks[4], (E, F)), bf1=jnp.zeros((1, F), jnp.float32),
        w2=n(ks[5], (F, E)), bf2=jnp.zeros((1, E), jnp.float32),
    )


if __name__ == "__main__":
    B, S, E = 2, 8, 32
    heads, num_layers, forward_expansion = 4, 2, 4
    F = forward_expansion * E

    key = jax.random.PRNGKey(0)
    kx, *kl = jax.random.split(key, 1 + num_layers)

    x = jax.random.normal(kx, (B, S, E), dtype=jnp.float32)
    # padding-style mask: batch 0 attends everywhere, batch 1 masks last 2 keys
    mask = jnp.ones((B, S, S), jnp.float32)
    mask = mask.at[1, :, S - 2:].set(0.0)

    layer_params = [init_layer_params(k, E, F) for k in kl]

    out = jax.block_until_ready(encoder(x, mask, layer_params, heads))
    ref = ref_encoder(x, mask, layer_params, heads)

    assert out.shape == (B, S, E)
    # bf16 activations + bf16 MXU matmuls (f32 accumulation) vs pure-f32 reference.
    assert jnp.allclose(out, ref, rtol=3e-2, atol=3e-2), "mismatch vs JAX reference"
    print("KERNEL_OK")
</pallas_src>

<mosaic_0001>
module attributes {stable_mosaic.version = 11 : i64} {
  func.func @qkv_proj_kernel(%arg0: i32, %arg1: i32, %arg2: memref<1x8x32xbf16, #tpu.memory_space<vmem>>, %arg3: memref<32x32xbf16, #tpu.memory_space<vmem>>, %arg4: memref<1x32xf32, #tpu.memory_space<vmem>>, %arg5: memref<32x32xbf16, #tpu.memory_space<vmem>>, %arg6: memref<1x32xf32, #tpu.memory_space<vmem>>, %arg7: memref<32x32xbf16, #tpu.memory_space<vmem>>, %arg8: memref<1x32xf32, #tpu.memory_space<vmem>>, %arg9: memref<1x8x32xbf16, #tpu.memory_space<vmem>>, %arg10: memref<1x8x32xbf16, #tpu.memory_space<vmem>>, %arg11: memref<1x8x32xbf16, #tpu.memory_space<vmem>>) attributes {dimension_semantics = [#tpu.dimension_semantics<parallel>, #tpu.dimension_semantics<parallel>], iteration_bounds = array<i64: 2, 1>, scalar_prefetch = 0 : i64, scratch_operands = 0 : i64, tpu.core_type = #tpu.core_type<tc>, window_params = [{transform_indices = @transform_0, window_bounds = array<i64: 1, 8, 32>}, {pipeline_mode = #tpu.pipeline_mode<synchronous>, transform_indices = @transform_1, window_bounds = array<i64: 32, 32>}, {pipeline_mode = #tpu.pipeline_mode<synchronous>, transform_indices = @transform_2, window_bounds = array<i64: 1, 32>}, {pipeline_mode = #tpu.pipeline_mode<synchronous>, transform_indices = @transform_3, window_bounds = array<i64: 32, 32>}, {pipeline_mode = #tpu.pipeline_mode<synchronous>, transform_indices = @transform_4, window_bounds = array<i64: 1, 32>}, {pipeline_mode = #tpu.pipeline_mode<synchronous>, transform_indices = @transform_5, window_bounds = array<i64: 32, 32>}, {pipeline_mode = #tpu.pipeline_mode<synchronous>, transform_indices = @transform_6, window_bounds = array<i64: 1, 32>}, {transform_indices = @transform_7, window_bounds = array<i64: 1, 8, 32>}, {transform_indices = @transform_8, window_bounds = array<i64: 1, 8, 32>}, {transform_indices = @transform_9, window_bounds = array<i64: 1, 8, 32>}]} {
    %c0 = arith.constant 0 : index
    %c0_0 = arith.constant 0 : index
    %c0_1 = arith.constant 0 : index
    %0 = vector.load %arg2[%c0, %c0_0, %c0_1] : memref<1x8x32xbf16, #tpu.memory_space<vmem>>, vector<1x8x32xbf16>
    %1 = vector.shape_cast %0 : vector<1x8x32xbf16> to vector<8x32xbf16>
    %c0_2 = arith.constant 0 : index
    %c0_3 = arith.constant 0 : index
    %2 = vector.load %arg3[%c0_2, %c0_3] : memref<32x32xbf16, #tpu.memory_space<vmem>>, vector<32x32xbf16>
    %cst = arith.constant dense<0.000000e+00> : vector<8x32xf32>
    %3 = tpu.matmul %1, %2, %cst {dimension_numbers = #tpu.dot_dimension_numbers<[1], [0], [0], [1], [0, 0, 1, 1], [], []>} : vector<8x32xbf16>, vector<32x32xbf16>, vector<8x32xf32> -> vector<8x32xf32>
    %c0_4 = arith.constant 0 : index
    %c0_5 = arith.constant 0 : index
    %4 = vector.load %arg4[%c0_4, %c0_5] : memref<1x32xf32, #tpu.memory_space<vmem>>, vector<1x32xf32>
    %5 = vector.broadcast %4 : vector<1x32xf32> to vector<8x32xf32>
    %6 = arith.addf %3, %5 : vector<8x32xf32>
    %7 = arith.truncf %6 : vector<8x32xf32> to vector<8x32xbf16>
    %c0_6 = arith.constant 0 : index
    %c0_7 = arith.constant 0 : index
    %c0_8 = arith.constant 0 : index
    %8 = vector.load %arg9[%c0_6, %c0_7, %c0_8] : memref<1x8x32xbf16, #tpu.memory_space<vmem>>, vector<1x8x32xbf16>
    %9 = vector.shape_cast %8 : vector<1x8x32xbf16> to vector<8x32xbf16>
    %10 = vector.shape_cast %7 : vector<8x32xbf16> to vector<1x8x32xbf16>
    tpu.vector_store %arg9[%c0_6, %c0_7, %c0_8], %10 {strides = array<i32>} : memref<1x8x32xbf16, #tpu.memory_space<vmem>>, vector<1x8x32xbf16>,
    %c0_9 = arith.constant 0 : index
    %c0_10 = arith.constant 0 : index
    %11 = vector.load %arg5[%c0_9, %c0_10] : memref<32x32xbf16, #tpu.memory_space<vmem>>, vector<32x32xbf16>
    %cst_11 = arith.constant dense<0.000000e+00> : vector<8x32xf32>
    %12 = tpu.matmul %1, %11, %cst_11 {dimension_numbers = #tpu.dot_dimension_numbers<[1], [0], [0], [1], [0, 0, 1, 1], [], []>} : vector<8x32xbf16>, vector<32x32xbf16>, vector<8x32xf32> -> vector<8x32xf32>
    %c0_12 = arith.constant 0 : index
    %c0_13 = arith.constant 0 : index
    %13 = vector.load %arg6[%c0_12, %c0_13] : memref<1x32xf32, #tpu.memory_space<vmem>>, vector<1x32xf32>
    %14 = vector.broadcast %13 : vector<1x32xf32> to vector<8x32xf32>
    %15 = arith.addf %12, %14 : vector<8x32xf32>
    %16 = arith.truncf %15 : vector<8x32xf32> to vector<8x32xbf16>
    %c0_14 = arith.constant 0 : index
    %c0_15 = arith.constant 0 : index
    %c0_16 = arith.constant 0 : index
    %17 = vector.load %arg10[%c0_14, %c0_15, %c0_16] : memref<1x8x32xbf16, #tpu.memory_space<vmem>>, vector<1x8x32xbf16>
    %18 = vector.shape_cast %17 : vector<1x8x32xbf16> to vector<8x32xbf16>
    %19 = vector.shape_cast %16 : vector<8x32xbf16> to vector<1x8x32xbf16>
    tpu.vector_store %arg10[%c0_14, %c0_15, %c0_16], %19 {strides = array<i32>} : memref<1x8x32xbf16, #tpu.memory_space<vmem>>, vector<1x8x32xbf16>,
    %c0_17 = arith.constant 0 : index
    %c0_18 = arith.constant 0 : index
    %20 = vector.load %arg7[%c0_17, %c0_18] : memref<32x32xbf16, #tpu.memory_space<vmem>>, vector<32x32xbf16>
    %cst_19 = arith.constant dense<0.000000e+00> : vector<8x32xf32>
    %21 = tpu.matmul %1, %20, %cst_19 {dimension_numbers = #tpu.dot_dimension_numbers<[1], [0], [0], [1], [0, 0, 1, 1], [], []>} : vector<8x32xbf16>, vector<32x32xbf16>, vector<8x32xf32> -> vector<8x32xf32>
    %c0_20 = arith.constant 0 : index
    %c0_21 = arith.constant 0 : index
    %22 = vector.load %arg8[%c0_20, %c0_21] : memref<1x32xf32, #tpu.memory_space<vmem>>, vector<1x32xf32>
    %23 = vector.broadcast %22 : vector<1x32xf32> to vector<8x32xf32>
    %24 = arith.addf %21, %23 : vector<8x32xf32>
    %25 = arith.truncf %24 : vector<8x32xf32> to vector<8x32xbf16>
    %c0_22 = arith.constant 0 : index
    %c0_23 = arith.constant 0 : index
    %c0_24 = arith.constant 0 : index
    %26 = vector.load %arg11[%c0_22, %c0_23, %c0_24] : memref<1x8x32xbf16, #tpu.memory_space<vmem>>, vector<1x8x32xbf16>
    %27 = vector.shape_cast %26 : vector<1x8x32xbf16> to vector<8x32xbf16>
    %28 = vector.shape_cast %25 : vector<8x32xbf16> to vector<1x8x32xbf16>
    tpu.vector_store %arg11[%c0_22, %c0_23, %c0_24], %28 {strides = array<i32>} : memref<1x8x32xbf16, #tpu.memory_space<vmem>>, vector<1x8x32xbf16>,
    return
  }
  func.func @transform_0(%arg0: i32, %arg1: i32) -> (i32, i32, i32) {
    %c0_i32 = arith.constant 0 : i32
    %c0_i32_0 = arith.constant 0 : i32
    return %arg0, %arg1, %c0_i32 : i32, i32, i32
  }
  func.func @transform_1(%arg0: i32, %arg1: i32) -> (i32, i32) {
    %c0_i32 = arith.constant 0 : i32
    %c0_i32_0 = arith.constant 0 : i32
    %c0_i32_1 = arith.constant 0 : i32
    return %c0_i32, %c0_i32_0 : i32, i32
  }
  func.func @transform_2(%arg0: i32, %arg1: i32) -> (i32, i32) {
    %c0_i32 = arith.constant 0 : i32
    %c0_i32_0 = arith.constant 0 : i32
    %c0_i32_1 = arith.constant 0 : i32
    return %c0_i32, %c0_i32_0 : i32, i32
  }
  func.func @transform_3(%arg0: i32, %arg1: i32) -> (i32, i32) {
    %c0_i32 = arith.constant 0 : i32
    %c0_i32_0 = arith.constant 0 : i32
    %c0_i32_1 = arith.constant 0 : i32
    return %c0_i32, %c0_i32_0 : i32, i32
  }
  func.func @transform_4(%arg0: i32, %arg1: i32) -> (i32, i32) {
    %c0_i32 = arith.constant 0 : i32
    %c0_i32_0 = arith.constant 0 : i32
    %c0_i32_1 = arith.constant 0 : i32
    return %c0_i32, %c0_i32_0 : i32, i32
  }
  func.func @transform_5(%arg0: i32, %arg1: i32) -> (i32, i32) {
    %c0_i32 = arith.constant 0 : i32
    %c0_i32_0 = arith.constant 0 : i32
    %c0_i32_1 = arith.constant 0 : i32
    return %c0_i32, %c0_i32_0 : i32, i32
  }
  func.func @transform_6(%arg0: i32, %arg1: i32) -> (i32, i32) {
    %c0_i32 = arith.constant 0 : i32
    %c0_i32_0 = arith.constant 0 : i32
    %c0_i32_1 = arith.constant 0 : i32
    return %c0_i32, %c0_i32_0 : i32, i32
  }
  func.func @transform_7(%arg0: i32, %arg1: i32) -> (i32, i32, i32) {
    %c0_i32 = arith.constant 0 : i32
    %c0_i32_0 = arith.constant 0 : i32
    return %arg0, %arg1, %c0_i32 : i32, i32, i32
  }
  func.func @transform_8(%arg0: i32, %arg1: i32) -> (i32, i32, i32) {
    %c0_i32 = arith.constant 0 : i32
    %c0_i32_0 = arith.constant 0 : i32
    return %arg0, %arg1, %c0_i32 : i32, i32, i32
  }
  func.func @transform_9(%arg0: i32, %arg1: i32) -> (i32, i32, i32) {
    %c0_i32 = arith.constant 0 : i32
    %c0_i32_0 = arith.constant 0 : i32
    return %arg0, %arg1, %c0_i32 : i32, i32, i32
  }
}

</mosaic_0001>

<bundles_post_ra>
// kernel: tpu_custom_call.1
= control target key start
LH: loop header
LB: loop body
LE: loop exit
PB: predicated region body
PF: predicated region fallthrough
CT: control target
= control target key end

     0   :  { %s1525_s0 = inlined_call_operand.hbm [shape: bf16[2,8,32], index: 0, kind: input, shape index: {}]   ;;  %s1526_s1 = inlined_call_operand.hbm [shape: bf16[32,32], index: 1, kind: input, shape index: {}]   ;;  %s1527_s2 = inlined_call_operand.vmem [shape: f32[1,32], index: 2, kind: input, shape index: {}]   ;;  %s1528_s3 = inlined_call_operand.hbm [shape: bf16[32,32], index: 3, kind: input, shape index: {}]   ;;  %s1529_s4 = inlined_call_operand.vmem [shape: f32[1,32], index: 4, kind: input, shape index: {}]   ;;  %s1530_s5 = inlined_call_operand.hbm [shape: bf16[32,32], index: 5, kind: input, shape index: {}]   ;;  %s1531_s6 = inlined_call_operand.vmem [shape: f32[1,32], index: 6, kind: input, shape index: {}]   ;;  %s1532_s7 = inlined_call_operand.hbm [shape: bf16[2,8,32], index: 7, kind: output, shape index: {0}]   ;;  %s1533_s8 = inlined_call_operand.hbm [shape: bf16[2,8,32], index: 8, kind: output, shape index: {1}]   ;;  %s1534_s9 = inlined_call_operand.hbm [shape: bf16[2,8,32], index: 9, kind: output, shape index: {2}]  }
   0x1   :  { %1542 = sst [smem:[#allocation22_spill]] %s1525_s0 }
   0x2   :  { %1543 = sst [smem:[#allocation23_spill]] %s1526_s1 }
   0x3   :  { %1544 = sst [smem:[#allocation24_spill]] %s1527_s2 }
   0x4   :  { %1545 = sst [smem:[#allocation25_spill]] %s1528_s3 }
   0x5   :  { %1546 = sst [smem:[#allocation26_spill]] %s1530_s5 }
   0x6   :  { %15 = vsyncpa [#allocation3], 0 }
   0x7   :  { %17 = vsyncpa [#allocation3 + $0x1], 0 }
   0x8   :  { %18 = vsyncpa [#allocation6], 0 }
   0x9   :  { %19 = vsyncpa [#allocation9], 0 }
   0xa   :  { %20 = vsyncpa [#allocation4], 0 }
   0xb   :  { %22 = vsyncpa [#allocation4 + $0x1], 0 }
   0xc   :  { %23 = vsyncpa [#allocation12], 0 }
   0xd   :  { %25 = vsyncpa [#allocation12 + $0x1], 0  ;;  %s1275_s30 = smov 0   ;;  %s1277_s10 = smov 0  }
   0xe   :  { %s1279_s11 = smov 0   ;;  %s1281_s12 = smov 0  }
   0xf   :  { %s1283_s13 = smov 0   ;;  %s1285_s14 = smov 0  }
  0x10 LB: > { %s1306_s15 = sadd.s32 4294967295, %s1218_s14   ;;  %p784_p0 = scmp.ge.s32.totalorder %s1218_s14, 1  ;;  %s1218_s14 = sphi %s1285_s14, %s31_s14   ;;  %s1214_s13 = sphi %s1283_s13, %s1574_s13   ;;  %s1210_s12 = sphi %s1281_s12, %s1573_s12   ;;  %s1206_s11 = sphi %s1279_s11, %s1572_s11   ;;  %s1202_s10 = sphi %s1277_s10, %s1571_s10   ;;  %s1198_s30 = sphi %s1275_s30, %s1570_s30  }
  0x11   : > { %p66_p1 = scmp.eq.s32.totalorder %s1306_s15, 0  ;;  %p286_p2 = scmp.lt.s32.totalorder %s1218_s14, 3 }
  0x12   : > { %s1547_s1 = sld [smem:[#allocation23_spill]]  ;;  %s1220_s20 = smov [#allocation5]  }
  0x13   : > { %p1314_p3 = pnand %p784_p0, %p286_p2  ;;  %s299_s21 = sshll.u32 %s1220_s20, 4  ;;  %s300_s21 = int_to_ptr.vmem [resolvable:$true] %s299_s21 }
  0x14   : > { %p788_p6 = scmp.ge.s32.totalorder %s1218_s14, 2  ;;  %s1550_s3 = sld [smem:[#allocation25_spill]] }
  0x15   : > { %p860_p4 = pneg %p1314_p3  ;;  %s1221_s26 = smov 64  }
  0x16   : > { %s1222_s27 = smov 4   ;;  %s1223_s28 = smov [#allocation7]  }
  0x17   : > { %p1322_p5 = pnand %p860_p4, %p66_p1  ;;  %s316_s29 = sshll.u32 %s1223_s28, 4  ;;  %s317_s29 = int_to_ptr.vmem [resolvable:$true] %s316_s29 }
  0x18   : > { %s297_s18 = sshll.u32 %s1547_s1, 4  ;;  %s1551_s5 = sld [smem:[#allocation26_spill]]  ;;  %s298_s18 = int_to_ptr.hbm [resolvable:$true] %s297_s18 }
  0x19   : > { %863 = dma.hbm_to_vmem [thread:$0]  (!%p1322_p5), %s298_s18, 256, %s300_s21, [#allocation6], %s1221_s26, %s1221_s26, %s1222_s27  }
  0x1a   : > { %s314_s25 = sshll.u32 %s1550_s3, 4  ;;  %s1224_s23 = smov [#allocation8]   ;;  %s315_s25 = int_to_ptr.hbm [resolvable:$true] %s314_s25 }
  0x1b   : > { %866 = dma.hbm_to_vmem [thread:$0]  (!%p1322_p5), %s315_s25, 256, %s317_s29, [#allocation6], %s1221_s26, %s1221_s26, %s1222_s27  }
  0x1c   : > { %s333_s24 = sshll.u32 %s1224_s23, 4  ;;  %s1535_s18 = sadd.s32 4294967294, %s1218_s14   ;;  %s334_s24 = int_to_ptr.vmem [resolvable:$true] %s333_s24 }
  0x1d   : > { %s43_s21 = sadd.s32 1, %s1214_s13  ;;  %s52_s28 = sadd.s32 1, %s1206_s11 }
  0x1e   : > { %s331_s20 = sshll.u32 %s1551_s5, 4  ;;  %p45_p7 = scmp.ge.s32.totalorder %s43_s21, 2  ;;  %s332_s20 = int_to_ptr.hbm [resolvable:$true] %s331_s20 }
  0x1f   : > { %869 = dma.hbm_to_vmem [thread:$0]  (!%p1322_p5), %s332_s20, 256, %s334_s24, [#allocation9], %s1221_s26, %s1221_s26, %s1222_s27  }
  0x20   : > { %p59_p8 = scmp.ne.s32.totalorder %s1206_s11, %s1202_s10  ;;  %p60_p9 = scmp.eq.s32.totalorder %s1218_s14, 0 }
  0x21   : > { %p65_p10 = scmp.ne.s32.totalorder %s1202_s10, %s1198_s30  ;;  %s1576_s21 = smov (%p45_p7, %s43_s21), 0 }
  0x22   : > { %1552 = sst [smem:[#allocation19_spill]] %s1576_s21  ;;  %p1349_p11 = por %p60_p9, %p59_p8 }
  0x23   : > { %p1355_p12 = por %p66_p1, %p65_p10  ;;  %s47_s26 = ssub.s32 %s1214_s13, %s1576_s21 }
  0x24   : > { %p217_p13 = scmp.eq.s32.totalorder %s1306_s15, 1  ;;  %p50_p0 = scmp.eq.s32.totalorder %s47_s26, 0 }
  0x25   : > { %p223_p2 = scmp.eq.s32.totalorder %s1535_s18, 1  ;;  %p887_p5 = scmp.lt.s32.totalorder %s1218_s14, 2 }
  0x26   : > { %p1364_p4 = por %p217_p13, %p59_p8  ;;  %s350_s17 = sand.u32 1, %s1206_s11  }
  0x27   : > { %s1370_s29 = scalar_select %p50_p0, %s1206_s11, %s52_s28  }
  0x28   : > { %p1372_p7 = por %p223_p2, %p65_p10  ;;  %s789_s20 = sshll.u32 %s350_s17, 2 }
  0x29   : > { %s790_s23 = sshll.u32 %s1214_s13, 2  ;;  %s1557_s0 = sld [smem:[#allocation22_spill]] }
  0x2a   : > { %s354_s3 = scalar_lea.vmem [#allocation2], %s789_s20  ;;  %p871_p8 = pnand %p887_p5, %p1349_p11 }
  0x2b   : > { %s363_s18 = sshll.u32 %s354_s3, 4  ;;  %s351_s28 = scalar_lea.sflag [#allocation3], %s350_s17  ;;  %s364_s18 = int_to_ptr.vmem [resolvable:$true] %s363_s18 }
  0x2d   : > { %372 = sbr.rel (%p1314_p3) target bundleno = 233 (0xe9), region = 48 }
  0x2f   : > { %s359_s26 = scalar_lea.hbm %s1557_s0, %s790_s23 }
  0x30   : > { %s361_s5 = sshll.u32 %s359_s26, 4  ;;  %s362_s5 = int_to_ptr.hbm [resolvable:$true] %s361_s5 }
  0x31   : > { %873 = dma.hbm_to_vmem [thread:$0]  (!%p871_p8), %s362_s5, 64, %s364_s18, %s351_s28  }
  0x32   : > { %s1386_s21 = sand.u32 1, %s1202_s10  }
  0x33   : > { %s1389_s1 = sshll.u32 %s1386_s21, 2  ;;  %s375_s3 = scalar_lea.sflag [#allocation3], %s1386_s21 }
  0x34   : > { %s378_s20 = scalar_lea.vmem [#allocation2], %s1389_s1 }
  0x35   : > { %1177 = dma.done.wait (%p1355_p12), %s375_s3, 64  }
  0x36   : > { %1179 = vsyncadd (%p1355_p12), %s375_s3, 4294967232 }
  0x37   : > { %1181 = dma.done.wait (%p66_p1), [#allocation6], 512  }
  0x38   : > { %1183 = vsyncadd (%p66_p1), [#allocation6], 4294966784 }
  0x39   : > { %1185 = dma.done.wait (%p66_p1), [#allocation9], 256  }
  0x3a   : > { %1187 = vsyncadd (%p66_p1), [#allocation9], 4294967040  ;;  %v835_v0 = vld [vmem:[#allocation5 + $0x8] sm:$0xff]  ;;  %v837_v1 = vld [vmem:[#allocation7 + $0x8] sm:$0xff]  ;;  %vm461_vm0 = vcmask 261120   ;;  %s829_s5 = sshll.u32 %s1210_s12, 2 }
  0x3b   : > { %v839_v2 = vld [vmem:[#allocation8 + $0x8] sm:$0xff]  ;;  %471 = vmatpush.bf16.msra.mxu0 %v835_v0  ;;  %507 = vmatpush.bf16.msra.mxu1 %v837_v1  ;;  %v834_v3 = vld [vmem:[#allocation5] sm:$0xff]  ;;  %v836_v4 = vld [vmem:[#allocation7] sm:$0xff]  ;;  %s556_s19 = sand.u32 1, %s1306_s15   ;;  %s1558_s2 = sld [smem:[#allocation24_spill]]  ;;  %vm479_vm1 = vcmask 257024  }
  0x3c   : > { %542 = vmatpush.bf16.msra.mxu2 %v839_v2  ;;  %v838_v5 = vld [vmem:[#allocation8] sm:$0xff]  ;;  %v440_v6 = vld [vmem:[%s378_s20] sm:$0xf]  ;;  %s588_s26 = scalar_lea.hbm %s1533_s8, %s829_s5  ;;  %s431_s28 = scalar_lea.vmem [#allocation11], %s1389_s1 }
  0x3d   : > { %v946_v8 = vld [vmem:[%s1529_s4] ss:$0 sm:$0xff]  ;;  %s1417_s3 = sshll.u32 %s431_s28, 4  ;;  %s573_s12 = scalar_lea.hbm %s1532_s7, %s829_s5  ;;  %s591_s3 = int_to_ptr.vmem [resolvable:$true] %s1417_s3 }
  0x3e   : > { %s1423_s15 = sshll.u32 %s588_s26, 4  ;;  %s1537_s18 = scalar_lea.vmem [#allocation10], %s1389_s1  ;;  %v947_v15 = vld [vmem:[%s1531_s6] ss:$0 sm:$0xff]  ;;  %s593_s15 = int_to_ptr.hbm [resolvable:$true] %s1423_s15 }
  0x3f   : > { %472 = vmatpush.bf16.msra.mxu0 %v834_v3  ;;  %508 = vmatpush.bf16.msra.mxu1 %v836_v4  ;;  %s1428_s25 = sshll.u32 %s1537_s18, 4  ;;  %s1430_s22 = sshll.u32 %s573_s12, 4 }
  0x40   : > { %543 = vmatpush.bf16.msra.mxu2 %v838_v5  ;;  %1559 = sst [smem:[#allocation20_spill]] %s1428_s25  ;;  %s603_s23 = scalar_lea.hbm %s1534_s9, %s829_s5 }
  0x41   : > { %v945_v7 = vld [vmem:[%s1558_s2] ss:$0 sm:$0xff]  ;;  %1560 = sst [smem:[#allocation21_spill]] %s1430_s22  ;;  %s1541_s20 = scalar_lea.vmem [#allocation13], %s1389_s1 }
  0x42   : > { %807 = vmatmul.msk.bf16.vlgmr.msra.gmra.mxu0 %vm461_vm0, %v440_v6  ;;  %816 = vmatmul.msk.bf16.vlgmr.msra.gmra.mxu1 %vm461_vm0, %v440_v6  ;;  %s1445_s12 = sshll.u32 %s1541_s20, 4  ;;  %s1447_s18 = sshll.u32 %s603_s23, 4  ;;  %s606_s12 = int_to_ptr.vmem [resolvable:$true] %s1445_s12  ;;  %s608_s18 = int_to_ptr.hbm [resolvable:$true] %s1447_s18 }
  0x43   : > { %825 = vmatmul.msk.bf16.vlgmr.msra.gmra.mxu2 %vm461_vm0, %v440_v6  ;;  %s1449_s0 = scalar_lea.sflag [#allocation12], %s556_s19  ;;  %s1082_s5 = sshra.s32 %s593_s15, 4  ;;  %s1083_s5 = int_to_ptr.hbm [resolvable:$true] %s1082_s5 }
  0x44   : > { %s1084_s17 = scalar_lea.hbm %s1083_s5, 4  ;;  %s1088_s25 = scalar_lea.hbm %s1533_s8, 8 }
  0x45   : > { %p1085_p1 = scmp.ne.s32.totalorder %s1083_s5, %s1084_s17  ;;  %p1089_p10 = scmp.lt.s32.totalorder %s1083_s5, %s1533_s8 }
  0x46   : > { %p1090_p11 = scmp.lt.s32.totalorder %s1088_s25, %s1084_s17 }
  0x47   : > { %p1086_p3 = pnand %p1085_p1, %p1364_p4 }
  0x48   : > { %p1091_p12 = por %p1090_p11, %p1089_p10 }
  0x49   : > { %p1087_p9 = pneg %p1086_p3 }
  0x4b   : > { %p1092_p13 = pnand %p1091_p12, %p1087_p9 }
  0xbf   : > { %v474_v9 = vpop.f32.mrf.mxu0  ;;  %v510_v10 = vpop.f32.mrf.mxu1 }
  0xc0   : > { %v475_v11 = vadd.f32 %v945_v7, %v474_v9  ;;  %v511_v12 = vadd.f32 %v946_v8, %v510_v10 }
  0xc2   : > { %v478_v13 = vpack.c.bf16 %v475_v11, %v475_v11  ;;  %v514_v14 = vpack.c.bf16 %v511_v12, %v511_v12 }
  0xc4   : > { %515 = vst.msk [vmem:[%s431_s28] sm:$0xf] %vm479_vm1, %v514_v14 }
  0xc5   : > { %1095 = shalt.err (!%p1092_p13)
}
  0xc6   : > { %s1561_s19 = sld [smem:[#allocation21_spill]]  ;;  %s1562_s23 = scalar_lea.vmem [#allocation10], %s1389_s1  ;;  %v545_v16 = vpop.f32.mrf.mxu2 }
  0xc7   : > { %855 = dma.vmem_to_hbm [thread:$0]  (%p1364_p4), %s591_s3, 64, %s593_s15, %s1449_s0   ;;  %480 = vst.msk [vmem:[%s1562_s23] sm:$0xf] %vm479_vm1, %v478_v13 }
  0xc8   : > { %s552_s22 = scalar_lea.sflag [#allocation4], %s1386_s21  ;;  %s1116_s28 = scalar_lea.hbm %s1532_s7, 8 }
  0xcc   : > { %s1563_s5 = int_to_ptr.hbm [resolvable:$true] %s1561_s19 }
  0xcd   : > { %s1110_s25 = sshra.s32 %s1563_s5, 4  ;;  %s1111_s25 = int_to_ptr.hbm [resolvable:$true] %s1110_s25 }
  0xce   : > { %s1112_s17 = scalar_lea.hbm %s1111_s25, 4  ;;  %p1117_p8 = scmp.lt.s32.totalorder %s1111_s25, %s1532_s7 }
  0xcf   : > { %p1113_p0 = scmp.ne.s32.totalorder %s1111_s25, %s1112_s17  ;;  %p1118_p1 = scmp.lt.s32.totalorder %s1116_s28, %s1112_s17 }
  0xd1   : > { %p1114_p2 = pnand %p1113_p0, %p1364_p4  ;;  %p1119_p3 = por %p1118_p1, %p1117_p8 }
  0xd3   : > { %p1115_p5 = pneg %p1114_p2 }
  0xd5   : > { %p1120_p9 = pnand %p1119_p3, %p1115_p5 }
  0xd7   : > { %1123 = shalt.err (!%p1120_p9)
}
  0xd8   : > { %s1564_s21 = smov %s1563_s5  ;;  %s1565_s3 = sld [smem:[#allocation20_spill]]  ;;  %v546_v17 = vadd.f32 %v947_v15, %v545_v16  ;;  %v476_v18 = vpop.f32.mrf.mxu0  ;;  %v512_v19 = vpop.f32.mrf.mxu1 }
  0xd9   : > { %s1567_s2 = scalar_lea.vmem [#allocation13], %s1389_s1  ;;  %s1138_s20 = sshra.s32 %s608_s18, 4  ;;  %s1139_s20 = int_to_ptr.hbm [resolvable:$true] %s1138_s20 }
  0xda   : > { %v549_v20 = vpack.c.bf16 %v546_v17, %v546_v17  ;;  %s1140_s23 = scalar_lea.hbm %s1139_s20, 4  ;;  %p1145_p13 = scmp.lt.s32.totalorder %s1139_s20, %s1534_s9 }
  0xdb   : > { %p1141_p10 = scmp.ne.s32.totalorder %s1139_s20, %s1140_s23 }
  0xdc   : > { %550 = vst.msk [vmem:[%s1567_s2] sm:$0xf] %vm479_vm1, %v549_v20 }
  0xdd   : > { %p1142_p11 = pnand %p1141_p10, %p1364_p4 }
  0xde   : > { %s1566_s15 = int_to_ptr.vmem [resolvable:$true] %s1565_s3 }
  0xdf   : > { %854 = dma.vmem_to_hbm [thread:$0]  (%p1364_p4), %s1566_s15, 64, %s1564_s21, %s552_s22  }
  0xe0   : > { %p1143_p12 = pneg %p1142_p11  ;;  %s1144_s22 = scalar_lea.hbm %s1534_s9, 8 }
  0xe1   : > { %p1146_p0 = scmp.lt.s32.totalorder %s1144_s22, %s1140_s23 }
  0xe3   : > { %p1147_p2 = por %p1146_p0, %p1145_p13 }
  0xe5   : > { %p1148_p5 = pnand %p1147_p2, %p1143_p12 }
  0xe7   : > { %1151 = shalt.err (!%p1148_p5)
}
  0xe8   : > { %856 = dma.vmem_to_hbm [thread:$0]  (%p1364_p4), %s606_s12, 64, %s608_s18, %s1449_s0   ;;  %v547_v21 = vpop.f32.mrf.mxu2 }
  0xe9 PF: > { %s619_s1 = sand.u32 1, %s1198_s30   ;;  %p875_p8 = pnand %p788_p6, %p1372_p7 }
  0xea   : > { %s620_s24 = scalar_lea.sflag [#allocation4], %s619_s1 }
  0xeb   : > { %p876_p1 = pneg %p875_p8 }
  0xed   : > { %1189 = dma.done.wait (%p876_p1), %s620_s24, 64  }
  0xee   : > { %1191 = vsyncadd (%p876_p1), %s620_s24, 4294967232  ;;  %s1568_s26 = sadd.s32 4294967294, %s1218_s14  }
  0xef   : > { %s629_s28 = sand.u32 1, %s1568_s26  }
  0xf0   : > { %s630_s21 = scalar_lea.sflag [#allocation12], %s629_s28 }
  0xf1   : > { %1193 = dma.done.wait (%p876_p1), %s630_s21, 128  }
  0xf2   : > { %1195 = vsyncadd (%p876_p1), %s630_s21, 4294967168  ;;  %s31_s14 = sadd.s32 1, %s1218_s14   ;;  %s1569_s27 = sld [smem:[#allocation19_spill]] }
  0xf3   : > { %p28_p4 = scmp.ge.s32.totalorder %s31_s14, 4   ;;  %s1570_s30 = smov %s1202_s10 }
  0xf4   : > { %s1571_s10 = smov %s1206_s11  ;;  %s1572_s11 = smov %s1370_s29 }
  0xf5   : > { %s1573_s12 = smov %s1214_s13  ;;  %30 = sbr.rel (!%p28_p4) target bundleno = 16 (0x10), region = 137 }
  0xf8   : > { %s1574_s13 = smov %s1569_s27 }
  0xfa   :  { %646 = vsyncpa [#allocation3], 1 }
  0xfb   :  { %648 = vsyncpa [#allocation3 + $0x1], 1 }
  0xfc   :  { %649 = vsyncpa [#allocation6], 1 }
  0xfd   :  { %650 = vsyncpa [#allocation9], 1 }
  0xfe   :  { %651 = vsyncpa [#allocation4], 1 }
  0xff   :  { %653 = vsyncpa [#allocation4 + $0x1], 1 }
 0x100   :  { %654 = vsyncpa [#allocation12], 1 }
 0x101   :  { %656 = vsyncpa [#allocation12 + $0x1], 1 }

</bundles_post_ra>
